<compile_context>
chip_gen: v7x
topology: tpu7x:2x2x1
jax: 0.10.0
libtpu: 0.0.40
codegen_flags: <defaults>
</compile_context>

<pallas_src>
import functools

import jax
import jax.numpy as jnp
from jax import lax
from jax.experimental import pallas as pl
from jax.experimental.pallas import tpu as pltpu


def _round_up(x: int, m: int) -> int:
    return ((x + m - 1) // m) * m


def _weighted_ce_kernel(preds_ref, targets_ref, num_ref, den_ref, *,
                        num_classes: int, unknown_weight: float,
                        n_samples: int, rows: int):
    # preds_ref:   (C, rows, 128) logits in their native dtype (class-major).
    # targets_ref: (rows, 128)    int8 labels.
    # num_ref/den_ref: (1, 8, 128) f32 per-tile partial sums.
    pid = pl.program_id(0)

    t = targets_ref[...].astype(jnp.int32)                      # (rows, 128)

    # Per-class slabs, cast to f32 in-kernel (keeps HBM stream in native dtype).
    xs = [preds_ref[c].astype(jnp.float32) for c in range(num_classes)]

    # Unrolled class reductions: dense VPU/EUP work, no cross-lane XLU.
    m = xs[0]
    for xc in xs[1:]:
        m = jnp.maximum(m, xc)                                   # (rows, 128)

    s = jnp.exp(xs[0] - m)
    logit_t = jnp.where(t == 0, xs[0], jnp.zeros_like(m))
    for c in range(1, num_classes):
        s = s + jnp.exp(xs[c] - m)
        logit_t = jnp.where(t == c, xs[c], logit_t)
    lse = m + jnp.log(s)                                         # (rows, 128)

    # Valid-sample mask from the flat sample index (n_samples is a trace-time
    # Python int; no SMEM needed).  Covers both the lane/row zero-pad and any
    # stale out-of-bounds rows of the last (non-divisible) tile.
    row_ids = lax.broadcasted_iota(jnp.int32, (rows, 128), 0)
    lane_ids = lax.broadcasted_iota(jnp.int32, (rows, 128), 1)
    gidx = pid * (rows * 128) + row_ids * 128 + lane_ids
    mask = gidx < n_samples

    # Class weights via compare/select: classes 0..C-2 -> 1, C-1 -> uw.
    # Masked lanes are zeroed with a select so stale/NaN data cannot propagate.
    w = jnp.where(t == num_classes - 1,
                  jnp.float32(unknown_weight), jnp.float32(1.0))
    w = jnp.where(mask, w, jnp.float32(0.0))
    per = jnp.where(mask, w * (lse - logit_t), jnp.float32(0.0))

    # Fold the per-tile partials into a single (8,128) vreg with plain VPU
    # adds (tile-aligned reshape, no data movement); the single cross-lane
    # reduction happens outside the kernel.
    num_ref[0] = jnp.sum(per.reshape(rows // 8, 8, 128), axis=0)
    den_ref[0] = jnp.sum(w.reshape(rows // 8, 8, 128), axis=0)


@functools.partial(jax.jit, static_argnames=("unknown_weight", "tile_rows_max"))
def weighted_csi_loss(predictions, targets, unknown_weight: float = 0.3,
                      *, tile_rows_max: int = 2048):
    """Pallas implementation of WeightedCSILoss.forward.

    predictions: [B, Z, C] float logits (any float dtype; cast in-kernel)
    targets:     [B, Z]    integer labels in [0, C)
    Returns a scalar float32 loss.
    """
    assert tile_rows_max % 32 == 0
    b, z, c = predictions.shape
    n = b * z

    # Samples map to (row, lane).  Pad N only up to a multiple of 32*128 so
    # the class-major reshape is legal and int8 targets stay tile-aligned;
    # everything else (including non-divisible last tiles) is masked in-kernel.
    n_pad = _round_up(n, 32 * 128)
    n_rows = n_pad // 128
    rows = min(tile_rows_max, n_rows)            # multiple of 32
    num_tiles = -(-n_rows // rows)

    # Class-major, lane-dense layout: (C, N_rows, 128).
    # TODO(synk): if the caller can supply class-major logits directly, this
    # transpose (one streaming copy, fusible via allow_input_fusion) goes away.
    preds_cm = predictions.reshape(n, c).T                       # (C, N)
    tgts = targets.reshape(n).astype(jnp.int8)                   # 1 B/sample
    if n_pad != n:
        preds_cm = jnp.pad(preds_cm, ((0, 0), (0, n_pad - n)))
        tgts = jnp.pad(tgts, (0, n_pad - n))
    preds_3d = preds_cm.reshape(c, n_rows, 128)
    tgts_2d = tgts.reshape(n_rows, 128)

    kernel = functools.partial(_weighted_ce_kernel,
                               num_classes=c,
                               unknown_weight=float(unknown_weight),
                               n_samples=n, rows=rows)

    itemsize = jnp.dtype(predictions.dtype).itemsize
    cost = pl.CostEstimate(
        flops=30 * n,
        transcendentals=(c + 1) * n,
        bytes_accessed=n * (c * itemsize + 1) + num_tiles * 8 * 128 * 4 * 2,
    )

    num_parts, den_parts = pl.pallas_call(
        kernel,
        grid=(num_tiles,),
        in_specs=[
            pl.BlockSpec((c, rows, 128), lambda i: (0, i, 0)),
            pl.BlockSpec((rows, 128), lambda i: (i, 0)),
        ],
        out_specs=(
            pl.BlockSpec((1, 8, 128), lambda i: (i, 0, 0)),
            pl.BlockSpec((1, 8, 128), lambda i: (i, 0, 0)),
        ),
        out_shape=(
            jax.ShapeDtypeStruct((num_tiles, 8, 128), jnp.float32),
            jax.ShapeDtypeStruct((num_tiles, 8, 128), jnp.float32),
        ),
        compiler_params=pltpu.CompilerParams(
            # Each tile writes its own partial block -> fully parallel grid
            # (lets both v7x TensorCores stream; harmless on v5e/v6e).
            dimension_semantics=("parallel",),
            vmem_limit_bytes=32 * 1024 * 1024,
            # Let XLA fuse the transpose/pad producers into the kernel operands
            # instead of materializing a separate HBM pass.
            allow_input_fusion=[True, True],
        ),
        cost_estimate=cost,
    )(preds_3d, tgts_2d)

    # Final tree reduction + divide (num_tiles * 1024 floats each: negligible).
    return jnp.sum(num_parts) / jnp.sum(den_parts)


def _reference_loss(predictions, targets, unknown_weight: float = 0.3):
    """Pure-JAX reference (mirrors F.cross_entropy with class weights)."""
    b, z, c = predictions.shape
    x = predictions.reshape(-1, c).astype(jnp.float32)
    t = targets.reshape(-1).astype(jnp.int32)
    w = jnp.concatenate(
        [jnp.ones((c - 1,), jnp.float32),
         jnp.array([unknown_weight], jnp.float32)])
    lse = jax.nn.logsumexp(x, axis=-1)
    logit_t = jnp.take_along_axis(x, t[:, None], axis=-1)[:, 0]
    w_t = w[t]
    return jnp.sum(w_t * (lse - logit_t)) / jnp.sum(w_t)


if __name__ == "__main__":
    key = jax.random.PRNGKey(0)
    k1, k2, k3, k4 = jax.random.split(key, 4)

    # Small shape consistent with the module: [batch, n_zones, n_classes=5].
    batch_size, n_zones, n_classes = 2, 6, 5
    predictions = jax.random.normal(k1, (batch_size, n_zones, n_classes),
                                    dtype=jnp.float32)
    targets = jax.random.randint(k2, (batch_size, n_zones), 0, n_classes,
                                 dtype=jnp.int32)

    loss = weighted_csi_loss(predictions, targets, unknown_weight=0.3)
    loss = jax.block_until_ready(loss)
    ref = _reference_loss(predictions, targets, unknown_weight=0.3)
    assert jnp.allclose(loss, ref, rtol=1e-4, atol=1e-5), (loss, ref)

    # Secondary check: multi-tile grid with a non-divisible last tile
    # (exercises the in-kernel remainder masking) using a small tile size.
    b2, z2 = 5, 2000
    predictions2 = jax.random.normal(k3, (b2, z2, n_classes), dtype=jnp.float32)
    targets2 = jax.random.randint(k4, (b2, z2), 0, n_classes, dtype=jnp.int32)
    loss2 = weighted_csi_loss(predictions2, targets2, unknown_weight=0.3,
                              tile_rows_max=64)
    loss2 = jax.block_until_ready(loss2)
    ref2 = _reference_loss(predictions2, targets2, unknown_weight=0.3)
    assert jnp.allclose(loss2, ref2, rtol=1e-4, atol=1e-5), (loss2, ref2)

    print("KERNEL_OK")
</pallas_src>

<mosaic_0001>
module attributes {stable_mosaic.version = 11 : i64} {
  func.func @_weighted_ce_kernel(%arg0: i32, %arg1: memref<5x32x128xf32, #tpu.memory_space<vmem>>, %arg2: memref<32x128xi8, #tpu.memory_space<vmem>>, %arg3: memref<1x8x128xf32, #tpu.memory_space<vmem>>, %arg4: memref<1x8x128xf32, #tpu.memory_space<vmem>>) attributes {dimension_semantics = [#tpu.dimension_semantics<parallel>], iteration_bounds = array<i64: 1>, scalar_prefetch = 0 : i64, scratch_operands = 0 : i64, tpu.core_type = #tpu.core_type<tc>, window_params = [{transform_indices = @transform_0, window_bounds = array<i64: 5, 32, 128>}, {transform_indices = @transform_1, window_bounds = array<i64: 32, 128>}, {transform_indices = @transform_2, window_bounds = array<i64: 1, 8, 128>}, {transform_indices = @transform_3, window_bounds = array<i64: 1, 8, 128>}]} {
    %c0 = arith.constant 0 : index
    %c0_0 = arith.constant 0 : index
    %0 = vector.load %arg2[%c0, %c0_0] : memref<32x128xi8, #tpu.memory_space<vmem>>, vector<32x128xi8>
    %1 = arith.extsi %0 : vector<32x128xi8> to vector<32x128xi32>
    %c0_1 = arith.constant 0 : index
    %c0_2 = arith.constant 0 : index
    %c0_3 = arith.constant 0 : index
    %2 = vector.load %arg1[%c0_1, %c0_2, %c0_3] : memref<5x32x128xf32, #tpu.memory_space<vmem>>, vector<1x32x128xf32>
    %3 = vector.shape_cast %2 : vector<1x32x128xf32> to vector<32x128xf32>
    %c1 = arith.constant 1 : index
    %c0_4 = arith.constant 0 : index
    %c0_5 = arith.constant 0 : index
    %4 = vector.load %arg1[%c1, %c0_4, %c0_5] : memref<5x32x128xf32, #tpu.memory_space<vmem>>, vector<1x32x128xf32>
    %5 = vector.shape_cast %4 : vector<1x32x128xf32> to vector<32x128xf32>
    %c2 = arith.constant 2 : index
    %c0_6 = arith.constant 0 : index
    %c0_7 = arith.constant 0 : index
    %6 = vector.load %arg1[%c2, %c0_6, %c0_7] : memref<5x32x128xf32, #tpu.memory_space<vmem>>, vector<1x32x128xf32>
    %7 = vector.shape_cast %6 : vector<1x32x128xf32> to vector<32x128xf32>
    %c3 = arith.constant 3 : index
    %c0_8 = arith.constant 0 : index
    %c0_9 = arith.constant 0 : index
    %8 = vector.load %arg1[%c3, %c0_8, %c0_9] : memref<5x32x128xf32, #tpu.memory_space<vmem>>, vector<1x32x128xf32>
    %9 = vector.shape_cast %8 : vector<1x32x128xf32> to vector<32x128xf32>
    %c4 = arith.constant 4 : index
    %c0_10 = arith.constant 0 : index
    %c0_11 = arith.constant 0 : index
    %10 = vector.load %arg1[%c4, %c0_10, %c0_11] : memref<5x32x128xf32, #tpu.memory_space<vmem>>, vector<1x32x128xf32>
    %11 = vector.shape_cast %10 : vector<1x32x128xf32> to vector<32x128xf32>
    %12 = arith.maximumf %3, %5 : vector<32x128xf32>
    %13 = arith.maximumf %12, %7 : vector<32x128xf32>
    %14 = arith.maximumf %13, %9 : vector<32x128xf32>
    %15 = arith.maximumf %14, %11 : vector<32x128xf32>
    %16 = arith.subf %3, %15 : vector<32x128xf32>
    %17 = math.exp %16 : vector<32x128xf32>
    %c0_i32 = arith.constant 0 : i32
    %18 = vector.broadcast %c0_i32 : i32 to vector<32x128xi32>
    %19 = arith.cmpi eq, %1, %18 : vector<32x128xi32>
    %cst = arith.constant 0.000000e+00 : f32
    %20 = vector.broadcast %cst : f32 to vector<32x128xf32>
    %21 = arith.select %19, %3, %20 : vector<32x128xi1>, vector<32x128xf32>
    %22 = arith.subf %5, %15 : vector<32x128xf32>
    %23 = math.exp %22 : vector<32x128xf32>
    %24 = arith.addf %17, %23 : vector<32x128xf32>
    %c1_i32 = arith.constant 1 : i32
    %25 = vector.broadcast %c1_i32 : i32 to vector<32x128xi32>
    %26 = arith.cmpi eq, %1, %25 : vector<32x128xi32>
    %27 = arith.select %26, %5, %21 : vector<32x128xi1>, vector<32x128xf32>
    %28 = arith.subf %7, %15 : vector<32x128xf32>
    %29 = math.exp %28 : vector<32x128xf32>
    %30 = arith.addf %24, %29 : vector<32x128xf32>
    %c2_i32 = arith.constant 2 : i32
    %31 = vector.broadcast %c2_i32 : i32 to vector<32x128xi32>
    %32 = arith.cmpi eq, %1, %31 : vector<32x128xi32>
    %33 = arith.select %32, %7, %27 : vector<32x128xi1>, vector<32x128xf32>
    %34 = arith.subf %9, %15 : vector<32x128xf32>
    %35 = math.exp %34 : vector<32x128xf32>
    %36 = arith.addf %30, %35 : vector<32x128xf32>
    %c3_i32 = arith.constant 3 : i32
    %37 = vector.broadcast %c3_i32 : i32 to vector<32x128xi32>
    %38 = arith.cmpi eq, %1, %37 : vector<32x128xi32>
    %39 = arith.select %38, %9, %33 : vector<32x128xi1>, vector<32x128xf32>
    %40 = arith.subf %11, %15 : vector<32x128xf32>
    %41 = math.exp %40 : vector<32x128xf32>
    %42 = arith.addf %36, %41 : vector<32x128xf32>
    %c4_i32 = arith.constant 4 : i32
    %43 = vector.broadcast %c4_i32 : i32 to vector<32x128xi32>
    %44 = arith.cmpi eq, %1, %43 : vector<32x128xi32>
    %45 = arith.select %44, %11, %39 : vector<32x128xi1>, vector<32x128xf32>
    %46 = math.log %42 : vector<32x128xf32>
    %47 = arith.addf %15, %46 : vector<32x128xf32>
    %48 = tpu.iota {dimensions = array<i32: 0>} : vector<32x128xi32>
    %49 = tpu.iota {dimensions = array<i32: 1>} : vector<32x128xi32>
    %c4096_i32 = arith.constant 4096 : i32
    %50 = arith.muli %arg0, %c4096_i32 : i32
    %c128_i32 = arith.constant 128 : i32
    %51 = vector.broadcast %c128_i32 : i32 to vector<32x128xi32>
    %52 = arith.muli %48, %51 : vector<32x128xi32>
    %53 = vector.broadcast %50 : i32 to vector<32x128xi32>
    %54 = arith.addi %53, %52 : vector<32x128xi32>
    %55 = arith.addi %54, %49 : vector<32x128xi32>
    %c12_i32 = arith.constant 12 : i32
    %56 = vector.broadcast %c12_i32 : i32 to vector<32x128xi32>
    %57 = arith.cmpi slt, %55, %56 : vector<32x128xi32>
    %c4_i32_12 = arith.constant 4 : i32
    %58 = vector.broadcast %c4_i32_12 : i32 to vector<32x128xi32>
    %59 = arith.cmpi eq, %1, %58 : vector<32x128xi32>
    %cst_13 = arith.constant 3.000000e-01 : f32
    %cst_14 = arith.constant 1.000000e+00 : f32
    %60 = vector.broadcast %cst_13 : f32 to vector<32x128xf32>
    %61 = vector.broadcast %cst_14 : f32 to vector<32x128xf32>
    %62 = arith.select %59, %60, %61 : vector<32x128xi1>, vector<32x128xf32>
    %cst_15 = arith.constant 0.000000e+00 : f32
    %63 = vector.broadcast %cst_15 : f32 to vector<32x128xf32>
    %64 = arith.select %57, %62, %63 : vector<32x128xi1>, vector<32x128xf32>
    %65 = arith.subf %47, %45 : vector<32x128xf32>
    %66 = arith.mulf %64, %65 : vector<32x128xf32>
    %cst_16 = arith.constant 0.000000e+00 : f32
    %67 = vector.broadcast %cst_16 : f32 to vector<32x128xf32>
    %68 = arith.select %57, %66, %67 : vector<32x128xi1>, vector<32x128xf32>
    %69 = vector.shape_cast %68 : vector<32x128xf32> to vector<4x8x128xf32>
    %cst_17 = arith.constant dense<0.000000e+00> : vector<8x128xf32>
    %70 = vector.multi_reduction <add>, %69, %cst_17 [0] : vector<4x8x128xf32> to vector<8x128xf32>
    %c0_18 = arith.constant 0 : index
    %c0_19 = arith.constant 0 : index
    %c0_20 = arith.constant 0 : index
    %71 = vector.load %arg3[%c0_18, %c0_19, %c0_20] : memref<1x8x128xf32, #tpu.memory_space<vmem>>, vector<1x8x128xf32>
    %72 = vector.shape_cast %71 : vector<1x8x128xf32> to vector<8x128xf32>
    %73 = vector.shape_cast %70 : vector<8x128xf32> to vector<1x8x128xf32>
    tpu.vector_store %arg3[%c0_18, %c0_19, %c0_20], %73 {strides = array<i32>} : memref<1x8x128xf32, #tpu.memory_space<vmem>>, vector<1x8x128xf32>,
    %74 = vector.shape_cast %64 : vector<32x128xf32> to vector<4x8x128xf32>
    %cst_21 = arith.constant dense<0.000000e+00> : vector<8x128xf32>
    %75 = vector.multi_reduction <add>, %74, %cst_21 [0] : vector<4x8x128xf32> to vector<8x128xf32>
    %c0_22 = arith.constant 0 : index
    %c0_23 = arith.constant 0 : index
    %c0_24 = arith.constant 0 : index
    %76 = vector.load %arg4[%c0_22, %c0_23, %c0_24] : memref<1x8x128xf32, #tpu.memory_space<vmem>>, vector<1x8x128xf32>
    %77 = vector.shape_cast %76 : vector<1x8x128xf32> to vector<8x128xf32>
    %78 = vector.shape_cast %75 : vector<8x128xf32> to vector<1x8x128xf32>
    tpu.vector_store %arg4[%c0_22, %c0_23, %c0_24], %78 {strides = array<i32>} : memref<1x8x128xf32, #tpu.memory_space<vmem>>, vector<1x8x128xf32>,
    return
  }
  func.func @transform_0(%arg0: i32) -> (i32, i32, i32) {
    %c0_i32 = arith.constant 0 : i32
    %c0_i32_0 = arith.constant 0 : i32
    %c0_i32_1 = arith.constant 0 : i32
    return %c0_i32, %arg0, %c0_i32_0 : i32, i32, i32
  }
  func.func @transform_1(%arg0: i32) -> (i32, i32) {
    %c0_i32 = arith.constant 0 : i32
    %c0_i32_0 = arith.constant 0 : i32
    return %arg0, %c0_i32 : i32, i32
  }
  func.func @transform_2(%arg0: i32) -> (i32, i32, i32) {
    %c0_i32 = arith.constant 0 : i32
    %c0_i32_0 = arith.constant 0 : i32
    %c0_i32_1 = arith.constant 0 : i32
    return %arg0, %c0_i32, %c0_i32_0 : i32, i32, i32
  }
  func.func @transform_3(%arg0: i32) -> (i32, i32, i32) {
    %c0_i32 = arith.constant 0 : i32
    %c0_i32_0 = arith.constant 0 : i32
    %c0_i32_1 = arith.constant 0 : i32
    return %arg0, %c0_i32, %c0_i32_0 : i32, i32, i32
  }
}

</mosaic_0001>

<bundles_post_ra>
// kernel: weighted_csi_loss.2
= control target key start
LH: loop header
LB: loop body
LE: loop exit
PB: predicated region body
PF: predicated region fallthrough
CT: control target
= control target key end

     0   :  { %s781_s0 = inlined_call_operand.vmem [shape: f32[1,5,32,128], index: 0, kind: input, shape index: {}]   ;;  %s782_s1 = inlined_call_operand.vmem [shape: s8[12], index: 1, kind: input, shape index: {}]   ;;  %s783_s2 = inlined_call_operand.<no memory space> [shape: s8[], index: 2, kind: input, shape index: {}]   ;;  %s784_s3 = inlined_call_operand.vmem [shape: f32[1,8,128], index: 3, kind: output, shape index: {0}]   ;;  %s785_s4 = inlined_call_operand.vmem [shape: f32[1,8,128], index: 4, kind: output, shape index: {1}]  }
   0x1   :  { %v10_v0 = vstv %s783_s2 }
   0x2   :  { %v12_v1 = vshll.u32 %v10_v0, 24 }
   0x4   :  { %v13_v2 = vshra.s32 %v12_v1, 24 }
   0x5   :  { %v492_v3 = vld [vmem:[%s781_s0] sm:$0xff]  ;;  %v497_v4 = vld [vmem:[%s781_s0 + $0x8] sm:$0xff]  ;;  %v502_v5 = vld [vmem:[%s781_s0 + $0x10] sm:$0xff]  ;;  %v459_v9 = vmov 0   ;;  %v121_v14 = vlaneseq }
   0x6   :  { %v507_v6 = vld [vmem:[%s781_s0 + $0x18] sm:$0xff]  ;;  %v512_v7 = vld [vmem:[%s781_s0 + $0x20] sm:$0xff]  ;;  %v517_v8 = vld [vmem:[%s781_s0 + $0x28] sm:$0xff]  ;;  %v131_v10 = vpack.c.b16 %v459_v9, %v13_v2 }
   0x7   :  { %v522_v11 = vld [vmem:[%s781_s0 + $0x30] sm:$0xff]  ;;  %v527_v12 = vld [vmem:[%s781_s0 + $0x38] sm:$0xff]  ;;  %v532_v13 = vld [vmem:[%s781_s0 + $0x40] sm:$0xff]  ;;  %v176_v15 = vmax.f32 %v492_v3, %v512_v7  ;;  %v177_v16 = vmax.f32 %v497_v4, %v517_v8  ;;  %vm123_vm0 = vcmp.lt.s32.totalorder %v121_v14, 12 }
   0x8   :  { %v541_v17 = vld [vmem:[%s781_s0 + $0x48] sm:$0xff]  ;;  %v546_v18 = vld [vmem:[%s781_s0 + $0x50] sm:$0xff]  ;;  %v551_v19 = vld [vmem:[%s781_s0 + $0x58] sm:$0xff]  ;;  %v132_v20 = vpack.c.b8 %v459_v9, %v131_v10  ;;  %v178_v21 = vmax.f32 %v502_v5, %v522_v11  ;;  %v179_v22 = vmax.f32 %v507_v6, %v527_v12 }
   0x9   :  { %v560_v23 = vld [vmem:[%s781_s0 + $0x60] sm:$0xff]  ;;  %v565_v24 = vld [vmem:[%s781_s0 + $0x68] sm:$0xff]  ;;  %v570_v25 = vld [vmem:[%s781_s0 + $0x70] sm:$0xff]  ;;  %v180_v26 = vmax.f32 %v176_v15, %v532_v13  ;;  %v181_v27 = vmax.f32 %v177_v16, %v541_v17 }
   0xa   :  { %v577_v28 = vld [vmem:[%s781_s0 + $0x78] sm:$0xff]  ;;  %v582_v29 = vld [vmem:[%s781_s0 + $0x80] sm:$0xff]  ;;  %v587_v30 = vld [vmem:[%s781_s0 + $0x88] sm:$0xff]  ;;  %133 = vst [vmem:[#allocation8 + $0x2] sm:$0x3] %v132_v20  ;;  %v182_v31 = vmax.f32 %v178_v21, %v546_v18  ;;  %v183_v32 = vmax.f32 %v179_v22, %v551_v19 }
   0xb   :  { %138 = vst [vmem:[#allocation8 + $0x4] sm:$0x3] %v132_v20  ;;  %143 = vst [vmem:[#allocation8 + $0x6] sm:$0x3] %v132_v20  ;;  %v594_v33 = vld [vmem:[%s781_s0 + $0x90] sm:$0xff]  ;;  %v599_v34 = vld [vmem:[%s781_s0 + $0x98] sm:$0xff]  ;;  %v184_v36 = vmax.f32 %v180_v26, %v560_v23  ;;  %v185_v37 = vmax.f32 %v181_v27, %v565_v24 }
   0xc   :  { %v116_v35 = vld [vmem:[%s782_s1] ss:$0 sm:$0xf]  ;;  %v186_v39 = vmax.f32 %v182_v31, %v570_v25  ;;  %v187_v40 = vmax.f32 %v183_v32, %v577_v28 }
   0xd   :  { %v117_v38 = vunpack.c.0.s8 %v116_v35  ;;  %v610_v41 = vmax.f32 %v184_v36, %v582_v29  ;;  %v613_v42 = vmax.f32 %v185_v37, %v587_v30  ;;  %v326_v37 = vand.u32 127, %v121_v14 }
   0xe   :  { %v616_v44 = vmax.f32 %v186_v39, %v594_v33  ;;  %v619_v45 = vmax.f32 %v187_v40, %v599_v34 }
   0xf   :  { %v124_v43 = vsel %vm123_vm0, %v117_v38, %v13_v2  ;;  %v192_v47 = vsub.f32 %v492_v3, %v610_v41  ;;  %v193_v48 = vsub.f32 %v497_v4, %v613_v42  ;;  %v212_v53 = vsub.f32 %v512_v7, %v610_v41 }
  0x10   :  { %v126_v46 = vpack.c.b16 %v459_v9, %v124_v43  ;;  %v194_v49 = vsub.f32 %v502_v5, %v616_v44  ;;  %v195_v50 = vsub.f32 %v507_v6, %v619_v45  ;;  %v213_v55 = vsub.f32 %v517_v8, %v613_v42 }
  0x11   :  { %v196_v52 = vmul.f32 1.442695, %v192_v47  ;;  %v198_v54 = vmul.f32 1.442695, %v193_v48  ;;  %v214_v57 = vsub.f32 %v522_v11, %v616_v44  ;;  %v215_v59 = vsub.f32 %v527_v12, %v619_v45 }
  0x12   :  { %v127_v51 = vpack.c.b8 %v459_v9, %v126_v46  ;;  %v200_v56 = vmul.f32 1.442695, %v194_v49  ;;  %v202_v58 = vmul.f32 1.442695, %v195_v50  ;;  %v216_v60 = vmul.f32 1.442695, %v212_v53 }
  0x13   :  { %411 = vpow2.f32 %v196_v52  ;;  %v236_v61 = vsub.f32 %v532_v13, %v610_v41  ;;  %v218_v62 = vmul.f32 1.442695, %v213_v55  ;;  %v220_v63 = vmul.f32 1.442695, %v214_v57 }
  0x14   :  { %128 = vst [vmem:[#allocation8] sm:$0x3] %v127_v51  ;;  %413 = vpow2.f32 %v198_v54  ;;  %v222_v0 = vmul.f32 1.442695, %v215_v59  ;;  %v237_v1 = vsub.f32 %v541_v17, %v613_v42  ;;  %v321_v9 = vshrl.u32 %v121_v14, 7 }
  0x15   :  { %415 = vpow2.f32 %v200_v56  ;;  %v240_v2 = vmul.f32 1.442695, %v236_v61  ;;  %v238_v10 = vsub.f32 %v546_v18, %v616_v44  ;;  %v239_v15 = vsub.f32 %v551_v19, %v619_v45 }
  0x16   :  { %417 = vpow2.f32 %v202_v58  ;;  %v260_v16 = vsub.f32 %v560_v23, %v610_v41  ;;  %v242_v20 = vmul.f32 1.442695, %v237_v1  ;;  %v261_v21 = vsub.f32 %v565_v24, %v613_v42 }
  0x17   :  { %419 = vpow2.f32 %v216_v60  ;;  %v322_v22 = vadd.s32 8, %v321_v9  ;;  %v244_v26 = vmul.f32 1.442695, %v238_v10  ;;  %v262_v27 = vsub.f32 %v570_v25, %v616_v44 }
  0x18   :  { %421 = vpow2.f32 %v218_v62  ;;  %v246_v32 = vmul.f32 1.442695, %v239_v15  ;;  %v263_v35 = vsub.f32 %v577_v28, %v619_v45  ;;  %v323_v36 = vadd.s32 16, %v321_v9 }
  0x19   :  { %423 = vpow2.f32 %v220_v63  ;;  %v264_v39 = vmul.f32 1.442695, %v260_v16  ;;  %v284_v40 = vsub.f32 %v582_v29, %v610_v41  ;;  %v324_v43 = vadd.s32 24, %v321_v9 }
  0x1a   :  { %425 = vpow2.f32 %v222_v0  ;;  %v328_v46 = vmul.u32 128, %v321_v9  ;;  %v266_v48 = vmul.f32 1.442695, %v261_v21  ;;  %v285_v49 = vsub.f32 %v587_v30, %v613_v42 }
  0x1b   :  { %427 = vpow2.f32 %v240_v2  ;;  %v329_v50 = vmul.u32 128, %v322_v22  ;;  %v268_v52 = vmul.f32 1.442695, %v262_v27  ;;  %v286_v14 = vsub.f32 %v594_v33, %v616_v44  ;;  %v401_v54 = vld [vmem:[#allocation8] sm:$0xff]  }
  0x1c   :  { %429 = vpow2.f32 %v242_v20  ;;  %v270_v55 = vmul.f32 1.442695, %v263_v35  ;;  %v287_v56 = vsub.f32 %v599_v34, %v619_v45  ;;  %v288_v58 = vmul.f32 1.442695, %v284_v40 }
  0x1d   :  { %v412_v31 = vpop.eup %411  ;;  %431 = vpow2.f32 %v244_v26  ;;  %v330_v59 = vmul.u32 128, %v323_v36  ;;  %v331_v60 = vmul.u32 128, %v324_v43  ;;  %v290_v62 = vmul.f32 1.442695, %v285_v49 }
  0x1e   :  { %v414_v38 = vpop.eup %413  ;;  %433 = vpow2.f32 %v246_v32  ;;  %v663_v63 = vadd.s32 %v328_v46, %v326_v37  ;;  %v665_v0 = vadd.s32 %v329_v50, %v326_v37  ;;  %v667_v2 = vunpack.c.0.s8 %v401_v54 }
  0x1f   :  { %v416_v47 = vpop.eup %415  ;;  %435 = vpow2.f32 %v264_v39  ;;  %v292_v10 = vmul.f32 1.442695, %v286_v14  ;;  %v669_v16 = vunpack.c.1.s8 %v401_v54  ;;  %v671_v20 = vunpack.c.2.s8 %v401_v54 }
  0x20   :  { %v418_v51 = vpop.eup %417  ;;  %437 = vpow2.f32 %v266_v48  ;;  %v294_v21 = vmul.f32 1.442695, %v287_v56  ;;  %v673_v22 = vunpack.c.3.s8 %v401_v54  ;;  %v675_v27 = vadd.s32 %v330_v59, %v326_v37 }
  0x21   :  { %v420_v53 = vpop.eup %419  ;;  %439 = vpow2.f32 %v268_v52  ;;  %vm300_vm1 = vcmp.eq.s32.totalorder %v667_v2, 4  ;;  %vm301_vm2 = vcmp.eq.s32.totalorder %v669_v16, 4  ;;  %vm302_vm3 = vcmp.eq.s32.totalorder %v671_v20, 4 }
  0x22   :  { %v422_v57 = vpop.eup %421  ;;  %v224_v9 = vadd.f32 %v420_v53, %v412_v31  ;;  %441 = vpow2.f32 %v270_v55  ;;  %v680_v39 = vadd.s32 %v331_v60, %v326_v37  ;;  %vm341_vm4 = vcmp.lt.s32.totalorder %v663_v63, 12 }
  0x23   :  { %v424_v61 = vpop.eup %423  ;;  %v225_v26 = vadd.f32 %v422_v57, %v414_v38  ;;  %443 = vpow2.f32 %v288_v58  ;;  %vm342_vm5 = vcmp.lt.s32.totalorder %v665_v0, 12  ;;  %vm303_vm6 = vcmp.eq.s32.totalorder %v673_v22, 4 }
  0x24   :  { %v426_v1 = vpop.eup %425  ;;  %v226_v32 = vadd.f32 %v424_v61, %v416_v47  ;;  %445 = vpow2.f32 %v290_v62  ;;  %v460_v43 = vmov 1.0   ;;  %vm343_vm7 = vcmp.lt.s32.totalorder %v675_v27, 12 }
  0x25   :  { %v428_v15 = vpop.eup %427  ;;  %v227_v31 = vadd.f32 %v426_v1, %v418_v51  ;;  %447 = vpow2.f32 %v292_v10  ;;  %v345_v46 = vsel %vm300_vm1, 0.3, %v460_v43  ;;  %v346_v47 = vsel %vm301_vm2, 0.3, %v460_v43 }
  0x26   :  { %v248_v35 = vadd.f32 %v428_v15, %v224_v9  ;;  %v430_v36 = vpop.eup %429  ;;  %449 = vpow2.f32 %v294_v21  ;;  %v347_v37 = vsel %vm302_vm3, 0.3, %v460_v43  ;;  %v694_v52 = vsel %vm341_vm4, %v345_v46, 0.0 }
  0x27   :  { %v432_v38 = vpop.eup %431  ;;  %v249_v40 = vadd.f32 %v430_v36, %v225_v26  ;;  %v698_v14 = vsel %vm342_vm5, %v346_v47, 0.0  ;;  %vm786_vm8 = vcmp.lt.s32.totalorder %v680_v39, 12  ;;  %v348_v55 = vsel %vm303_vm6, 0.3, %v460_v43 }
  0x28   :  { %v434_v48 = vpop.eup %433  ;;  %v250_v49 = vadd.f32 %v432_v38, %v226_v32  ;;  %v369_v56 = vadd.f32 %v698_v14, %v694_v52  ;;  %v707_v59 = vsel %vm343_vm7, %v347_v37, 0.0  ;;  %vm204_vm9 = vcmp.eq.s32.totalorder %v667_v2, 0 }
  0x29   :  { %v436_v50 = vpop.eup %435  ;;  %v251_v51 = vadd.f32 %v434_v48, %v227_v31  ;;  %v713_v10 = vsel %vm786_vm8, %v348_v55, 0.0  ;;  %vm205_vm10 = vcmp.eq.s32.totalorder %v669_v16, 0  ;;  %vm206_vm11 = vcmp.eq.s32.totalorder %v671_v20, 0 }
  0x2a   :  { %v438_v53 = vpop.eup %437  ;;  %v272_v54 = vadd.f32 %v436_v50, %v248_v35  ;;  %v370_v62 = vadd.f32 %v369_v56, %v707_v59  ;;  %vm207_vm12 = vcmp.eq.s32.totalorder %v673_v22, 0  ;;  %v208_v36 = vsel %vm204_vm9, %v492_v3, 0.0 }
  0x2b   :  { %v440_v57 = vpop.eup %439  ;;  %v273_v58 = vadd.f32 %v438_v53, %v249_v40  ;;  %vm228_vm13 = vcmp.eq.s32.totalorder %v667_v2, 1  ;;  %v209_v40 = vsel %vm205_vm10, %v497_v4, 0.0  ;;  %vm229_vm14 = vcmp.eq.s32.totalorder %v669_v16, 1 }
  0x2c   :  { %v442_v60 = vpop.eup %441  ;;  %v274_v61 = vadd.f32 %v440_v57, %v250_v49  ;;  %v371_v26 = vadd.f32 %v370_v62, %v713_v10  ;;  %v210_v46 = vsel %vm206_vm11, %v502_v5, 0.0  ;;  %v211_v47 = vsel %vm207_vm12, %v507_v6, 0.0 }
  0x2d   :  { %v444_v1 = vpop.eup %443  ;;  %v275_v9 = vadd.f32 %v442_v60, %v251_v51  ;;  %vm230_vm15 = vcmp.eq.s32.totalorder %v671_v20, 1  ;;  %vm231_vm0 = vcmp.eq.s32.totalorder %v673_v22, 1  ;;  %v232_v3 = vsel %vm228_vm13, %v512_v7, %v208_v36 }
  0x2e   :  { %v446_v15 = vpop.eup %445  ;;  %v296_v21 = vadd.f32 %v444_v1, %v272_v54  ;;  %372 = vst [vmem:[%s785_s4] sm:$0xff] %v371_v26  ;;  %vm252_vm9 = vcmp.eq.s32.totalorder %v667_v2, 2  ;;  %v233_v4 = vsel %vm229_vm14, %v517_v8, %v209_v40  ;;  %vm253_vm10 = vcmp.eq.s32.totalorder %v669_v16, 2 }
  0x2f   :  { %v448_v32 = vpop.eup %447  ;;  %v297_v31 = vadd.f32 %v446_v15, %v273_v58  ;;  %v234_v48 = vsel %vm230_vm15, %v522_v11, %v210_v46  ;;  %vm254_vm11 = vcmp.eq.s32.totalorder %v671_v20, 2  ;;  %v235_v5 = vsel %vm231_vm0, %v527_v12, %v211_v47 }
  0x30   :  { %v450_v35 = vpop.eup %449  ;;  %v298_v38 = vadd.f32 %v448_v32, %v274_v61  ;;  %451 = vlog2.f32 %v296_v21  ;;  %vm255_vm12 = vcmp.eq.s32.totalorder %v673_v22, 2  ;;  %v256_v6 = vsel %vm252_vm9, %v532_v13, %v232_v3 }
  0x31   :  { %v299_v43 = vadd.f32 %v450_v35, %v275_v9  ;;  %453 = vlog2.f32 %v297_v31  ;;  %vm276_vm8 = vcmp.eq.s32.totalorder %v667_v2, 3  ;;  %v257_v7 = vsel %vm253_vm10, %v541_v17, %v233_v4 }
  0x32   :  { %455 = vlog2.f32 %v298_v38  ;;  %vm277_vm13 = vcmp.eq.s32.totalorder %v669_v16, 3  ;;  %v258_v8 = vsel %vm254_vm11, %v546_v18, %v234_v48  ;;  %vm278_vm14 = vcmp.eq.s32.totalorder %v671_v20, 3 }
  0x33   :  { %457 = vlog2.f32 %v299_v43  ;;  %v259_v11 = vsel %vm255_vm12, %v551_v19, %v235_v5  ;;  %vm279_vm15 = vcmp.eq.s32.totalorder %v673_v22, 3  ;;  %v280_v12 = vsel %vm276_vm8, %v560_v23, %v256_v6 }
  0x34   :  { %v281_v37 = vsel %vm277_vm13, %v565_v24, %v257_v7  ;;  %v282_v50 = vsel %vm278_vm14, %v570_v25, %v258_v8  ;;  %v283_v53 = vsel %vm279_vm15, %v577_v28, %v259_v11  ;;  %v304_v18 = vsel %vm300_vm1, %v582_v29, %v280_v12 }
  0x35   :  { %v305_v23 = vsel %vm301_vm2, %v587_v30, %v281_v37  ;;  %v306_v25 = vsel %vm302_vm3, %v594_v33, %v282_v50  ;;  %v307_v29 = vsel %vm303_vm6, %v599_v34, %v283_v53  ;;  %vm787_vm1 = vcmp.lt.s32.totalorder %v680_v39, 12 }
  0x3a   :  { %v452_v49 = vpop.eup %451 }
  0x3b   :  { %v454_v13 = vpop.eup %453  ;;  %v309_v51 = vmul.f32 0.6931472, %v452_v49 }
  0x3c   :  { %v456_v17 = vpop.eup %455  ;;  %v311_v54 = vmul.f32 0.6931472, %v454_v13 }
  0x3d   :  { %v458_v19 = vpop.eup %457  ;;  %v313_v55 = vmul.f32 0.6931472, %v456_v17  ;;  %v316_v24 = vadd.f32 %v309_v51, %v610_v41 }
  0x3e   :  { %v315_v56 = vmul.f32 0.6931472, %v458_v19  ;;  %v317_v28 = vadd.f32 %v311_v54, %v613_v42 }
  0x3f   :  { %v318_v2 = vadd.f32 %v313_v55, %v616_v44  ;;  %v353_v57 = vsub.f32 %v316_v24, %v304_v18 }
  0x40   :  { %v319_v16 = vadd.f32 %v315_v56, %v619_v45  ;;  %v354_v30 = vsub.f32 %v317_v28, %v305_v23 }
  0x41   :  { %v355_v58 = vsub.f32 %v318_v2, %v306_v25  ;;  %v357_v41 = vmul.f32 %v353_v57, %v694_v52 }
  0x42   :  { %v356_v60 = vsub.f32 %v319_v16, %v307_v29  ;;  %v358_v20 = vmul.f32 %v354_v30, %v698_v14 }
  0x43   :  { %v359_v33 = vmul.f32 %v355_v58, %v707_v59  ;;  %v361_v42 = vsel %vm341_vm4, %v357_v41, 0.0 }
  0x44   :  { %v360_v22 = vmul.f32 %v356_v60, %v713_v10  ;;  %v362_v34 = vsel %vm342_vm5, %v358_v20, 0.0 }
  0x45   :  { %v363_v44 = vsel %vm343_vm7, %v359_v33, 0.0  ;;  %v365_v45 = vadd.f32 %v362_v34, %v361_v42 }
  0x46   :  { %v364_v52 = vsel %vm787_vm1, %v360_v22, 0.0 }
  0x47   :  { %v366_v61 = vadd.f32 %v365_v45, %v363_v44 }
  0x49   :  { %v367_v62 = vadd.f32 %v366_v61, %v364_v52 }
  0x4b   :  { %368 = vst [vmem:[%s784_s3] sm:$0xff] %v367_v62 }

</bundles_post_ra>
